<compile_context>
chip_gen: v6e
topology: v6e:2x2x1
jax: 0.10.0
libtpu: 0.0.40
codegen_flags: <defaults>
</compile_context>

<pallas_src>
import jax
import jax.numpy as jnp
from jax.experimental import pallas as pl
from jax.experimental.pallas import tpu as pltpu


_LANES = 128
# Packed rows per grid step. 4096 rows x 128 lanes x f32 = 2 MiB per buffer;
# double-buffered in + out plus the resident 128x128 weight is ~8.3 MiB,
# comfortably under scoped-VMEM on v5e (16 MiB default of 128 MiB physical),
# v6e (32/128) and v7x (32/64). 2 MiB DMAs sit at the measured HBM-roofline
# sweet spot for memory-bound streaming kernels.
_MAX_ROW_TILE = 4096


def _packed_linear_kernel(x_ref, w_ref, b_ref, o_ref):
    # Dense [TILE, 128] @ [128, 128] on the MXU (compute is negligible vs DMA),
    # bias broadcast-add on the VPU, single unmasked lane-dense store.
    y = jnp.dot(x_ref[...], w_ref[...], preferred_element_type=jnp.float32)
    o_ref[...] = (y + b_ref[...]).astype(o_ref.dtype)


def _round_up(x, m):
    return (x + m - 1) // m * m


def node_feature_embedding(bounding_boxes, weight, bias, *, max_row_tile=_MAX_ROW_TILE):
    """Pallas equivalent of NodeFeatureEmbedding.forward (y = x @ W^T + b).

    Args:
      bounding_boxes: [N, in_dim] float32
      weight:         [out_dim, in_dim] float32 (PyTorch nn.Linear convention)
      bias:           [out_dim] float32
      max_row_tile:   max packed (128-lane) rows per grid step.
    Returns:
      [N, out_dim] float32
    """
    n, in_dim = bounding_boxes.shape
    out_dim, w_in = weight.shape
    assert w_in == in_dim, "weight shape must be [out_dim, in_dim]"

    # Nodes packed per 128-lane row (32 for the 4->4 bbox layer).
    pack = max(1, _LANES // max(in_dim, out_dim))
    lw_in, lw_out = pack * in_dim, pack * out_dim

    # Pad node count so the packed row count is a multiple of the row tile:
    # every block stays (8,128)-aligned -> only dense, unmasked stores, and the
    # last grid step never touches a ragged tail. For small N this collapses to
    # a single tile; padding is skipped entirely when N already lines up.
    rows = pl.cdiv(n, pack)
    row_tile = min(max_row_tile, _round_up(rows, 8))
    rows_padded = _round_up(rows, row_tile)
    n_padded = rows_padded * pack

    x = bounding_boxes
    if n_padded != n:
        x = jnp.pad(x, ((0, n_padded - n), (0, 0)))
    x_packed = x.reshape(rows_padded, lw_in)   # contiguous row-major -> free reshape

    # Block-diagonal weight (pack copies of W^T) and lane-tiled bias. Both are
    # tiny, computed once in the wrapper and held resident in VMEM (constant
    # index_map -> fetched a single time).
    w_bd = jnp.kron(jnp.eye(pack, dtype=weight.dtype), weight.T)   # [lw_in, lw_out]
    b_tiled = jnp.tile(bias, pack).reshape(1, lw_out)              # [1, lw_out]

    # Explicit VMEM budget: double-buffered in/out tiles + resident weight/bias,
    # with headroom; portable across v5e/v6e/v7x scoped-VMEM defaults.
    itemsize = jnp.dtype(x.dtype).itemsize
    budget = (2 * row_tile * lw_in + 2 * row_tile * lw_out
              + lw_in * lw_out + lw_out) * itemsize
    vmem_limit = int(min(max(budget + (4 << 20), 16 << 20), 32 << 20))

    grid = (rows_padded // row_tile,)

    # Advisory cost hint for XLA's scheduler around the custom call.
    cost = pl.CostEstimate(
        flops=2 * rows_padded * lw_in * lw_out,
        transcendentals=0,
        bytes_accessed=(rows_padded * (lw_in + lw_out) + lw_in * lw_out + lw_out)
        * itemsize,
    )

    y_packed = pl.pallas_call(
        _packed_linear_kernel,
        out_shape=jax.ShapeDtypeStruct((rows_padded, lw_out), x.dtype),
        grid=grid,
        in_specs=[
            pl.BlockSpec((row_tile, lw_in), lambda i: (i, 0)),   # streamed x tiles
            pl.BlockSpec((lw_in, lw_out), lambda i: (0, 0)),     # resident weight
            pl.BlockSpec((1, lw_out), lambda i: (0, 0)),         # resident bias
        ],
        out_specs=pl.BlockSpec((row_tile, lw_out), lambda i: (i, 0)),
        compiler_params=pltpu.CompilerParams(
            dimension_semantics=("parallel",),   # shards row grid across v7x's 2 TCs
            vmem_limit_bytes=vmem_limit,
        ),
        cost_estimate=cost,
    )(x_packed, w_bd, b_tiled)

    # Unpack and drop padded nodes.
    return y_packed.reshape(rows_padded * pack, out_dim)[:n]


def init_params(key, in_dim=4, out_dim=4):
    # Deterministic init mirroring nn.Linear's default U(-1/sqrt(in), 1/sqrt(in)).
    kw, kb = jax.random.split(key)
    bound = 1.0 / jnp.sqrt(jnp.float32(in_dim))
    weight = jax.random.uniform(kw, (out_dim, in_dim), jnp.float32, -bound, bound)
    bias = jax.random.uniform(kb, (out_dim,), jnp.float32, -bound, bound)
    return weight, bias


if __name__ == "__main__":
    key = jax.random.PRNGKey(0)
    k_x, k_p, k_x2 = jax.random.split(key, 3)

    bbox_in_dim, bbox_out_dim = 4, 4
    weight, bias = init_params(k_p, bbox_in_dim, bbox_out_dim)

    # Test 1: 37 nodes — exercises pad-to-32-pack / pad-to-row-tile + slice-back,
    # single grid step.
    num_nodes = 37
    bounding_boxes = jax.random.uniform(k_x, (num_nodes, bbox_in_dim), jnp.float32)
    out = node_feature_embedding(bounding_boxes, weight, bias)
    out = jax.block_until_ready(out)
    ref = bounding_boxes @ weight.T + bias
    assert out.shape == (num_nodes, bbox_out_dim)
    assert jnp.allclose(out, ref, atol=1e-5, rtol=1e-5), "mismatch vs reference (N=37)"

    # Test 2: 300 nodes with a tiny forced row tile — exercises the multi-step
    # grid / streaming path at small shapes.
    num_nodes2 = 300
    bbox2 = jax.random.uniform(k_x2, (num_nodes2, bbox_in_dim), jnp.float32)
    out2 = node_feature_embedding(bbox2, weight, bias, max_row_tile=8)
    out2 = jax.block_until_ready(out2)
    ref2 = bbox2 @ weight.T + bias
    assert out2.shape == (num_nodes2, bbox_out_dim)
    assert jnp.allclose(out2, ref2, atol=1e-5, rtol=1e-5), "mismatch vs reference (N=300)"

    print("KERNEL_OK")
</pallas_src>

<mosaic_0001>
module attributes {stable_mosaic.version = 11 : i64} {
  func.func @_packed_linear_kernel(%arg0: i32, %arg1: memref<8x128xf32, #tpu.memory_space<vmem>>, %arg2: memref<128x128xf32, #tpu.memory_space<vmem>>, %arg3: memref<1x128xf32, #tpu.memory_space<vmem>>, %arg4: memref<8x128xf32, #tpu.memory_space<vmem>>) attributes {dimension_semantics = [#tpu.dimension_semantics<parallel>], iteration_bounds = array<i64: 1>, scalar_prefetch = 0 : i64, scratch_operands = 0 : i64, tpu.core_type = #tpu.core_type<tc>, window_params = [{transform_indices = @transform_0, window_bounds = array<i64: 8, 128>}, {pipeline_mode = #tpu.pipeline_mode<synchronous>, transform_indices = @transform_1, window_bounds = array<i64: 128, 128>}, {pipeline_mode = #tpu.pipeline_mode<synchronous>, transform_indices = @transform_2, window_bounds = array<i64: 1, 128>}, {transform_indices = @transform_3, window_bounds = array<i64: 8, 128>}]} {
    %c0 = arith.constant 0 : index
    %c0_0 = arith.constant 0 : index
    %0 = vector.load %arg1[%c0, %c0_0] : memref<8x128xf32, #tpu.memory_space<vmem>>, vector<8x128xf32>
    %c0_1 = arith.constant 0 : index
    %c0_2 = arith.constant 0 : index
    %1 = vector.load %arg2[%c0_1, %c0_2] : memref<128x128xf32, #tpu.memory_space<vmem>>, vector<128x128xf32>
    %cst = arith.constant dense<0.000000e+00> : vector<8x128xf32>
    %2 = tpu.matmul %0, %1, %cst {dimension_numbers = #tpu.dot_dimension_numbers<[1], [0], [0], [1], [0, 0, 1, 1], [], []>} : vector<8x128xf32>, vector<128x128xf32>, vector<8x128xf32> -> vector<8x128xf32>
    %c0_3 = arith.constant 0 : index
    %c0_4 = arith.constant 0 : index
    %3 = vector.load %arg3[%c0_3, %c0_4] : memref<1x128xf32, #tpu.memory_space<vmem>>, vector<1x128xf32>
    %4 = vector.broadcast %3 : vector<1x128xf32> to vector<8x128xf32>
    %5 = arith.addf %2, %4 : vector<8x128xf32>
    %c0_5 = arith.constant 0 : index
    %c0_6 = arith.constant 0 : index
    %6 = vector.load %arg4[%c0_5, %c0_6] : memref<8x128xf32, #tpu.memory_space<vmem>>, vector<8x128xf32>
    tpu.vector_store %arg4[%c0_5, %c0_6], %5 {strides = array<i32>} : memref<8x128xf32, #tpu.memory_space<vmem>>, vector<8x128xf32>,
    return
  }
  func.func @transform_0(%arg0: i32) -> (i32, i32) {
    %c0_i32 = arith.constant 0 : i32
    %c0_i32_0 = arith.constant 0 : i32
    return %arg0, %c0_i32 : i32, i32
  }
  func.func @transform_1(%arg0: i32) -> (i32, i32) {
    %c0_i32 = arith.constant 0 : i32
    %c0_i32_0 = arith.constant 0 : i32
    %c0_i32_1 = arith.constant 0 : i32
    return %c0_i32, %c0_i32_0 : i32, i32
  }
  func.func @transform_2(%arg0: i32) -> (i32, i32) {
    %c0_i32 = arith.constant 0 : i32
    %c0_i32_0 = arith.constant 0 : i32
    %c0_i32_1 = arith.constant 0 : i32
    return %c0_i32, %c0_i32_0 : i32, i32
  }
  func.func @transform_3(%arg0: i32) -> (i32, i32) {
    %c0_i32 = arith.constant 0 : i32
    %c0_i32_0 = arith.constant 0 : i32
    return %arg0, %c0_i32 : i32, i32
  }
}

</mosaic_0001>

<bundles_post_ra>
// kernel: tpu_custom_call.1
= control target key start
LH: loop header
LB: loop body
LE: loop exit
PB: predicated region body
PF: predicated region fallthrough
CT: control target
= control target key end

     0   :  { %8 = vsyncpa [#allocation3], 0  ;;  %s317_s0 = inlined_call_operand.hbm [shape: f32[8,128], index: 0, kind: input, shape index: {}]   ;;  %s318_s1 = inlined_call_operand.hbm [shape: f32[128,128], index: 1, kind: input, shape index: {}]   ;;  %s319_s2 = inlined_call_operand.vmem [shape: f32[1,128], index: 2, kind: input, shape index: {}]   ;;  %s320_s3 = inlined_call_operand.hbm [shape: f32[8,128], index: 3, kind: output, shape index: {}]  }
   0x1   :  { %9 = vsyncpa [#allocation6], 0 }
   0x2   :  { %10 = vsyncpa [#allocation4], 0  ;;  %s278_s12 = smov [#allocation2]   ;;  %s279_s14 = smov [#allocation5]  }
   0x3   :  { %s17_s13 = sshll.u32 %s278_s12, 4  ;;  %s26_s15 = sshll.u32 %s279_s14, 4  ;;  %s18_s13 = int_to_ptr.vmem [resolvable:$true] %s17_s13  ;;  %s27_s15 = int_to_ptr.vmem [resolvable:$true] %s26_s15 }
   0x4   :  { %s220_s16 = scalar_lea.vmem %s18_s13, 128  ;;  %p225_p1 = scmp.lt.s32.totalorder %s18_s13, %s18_s13 }
   0x5   :  { %p221_p0 = scmp.ne.s32.totalorder %s18_s13, %s220_s16  ;;  %p226_p2 = scmp.lt.s32.totalorder %s220_s16, %s220_s16 }
   0x7   :  { %p227_p3 = por %p226_p2, %p225_p1 }
   0x9   :  { %p228_p4 = pnand %p227_p3, %p221_p0 }
   0xb   :  { %231 = shalt.err (!%p228_p4)
}
   0xc   :  { %20 = dma.hbm_to_vmem [thread:$0]  %s317_s0, 128, %s18_s13, [#allocation3]  }
   0xd   :  { %s240_s19 = scalar_lea.vmem %s27_s15, 2048  ;;  %p245_p6 = scmp.lt.s32.totalorder %s27_s15, %s27_s15 }
   0xe   :  { %p241_p5 = scmp.ne.s32.totalorder %s27_s15, %s240_s19  ;;  %p246_p7 = scmp.lt.s32.totalorder %s240_s19, %s240_s19 }
  0x10   :  { %p247_p8 = por %p246_p7, %p245_p6 }
  0x12   :  { %p248_p9 = pnand %p247_p8, %p241_p5 }
  0x14   :  { %251 = shalt.err (!%p248_p9)
}
  0x15   :  { %s280_s20 = smov 128   ;;  %s281_s21 = smov 8  }
  0x16   :  { %32 = dma.hbm_to_vmem [thread:$0]  %s318_s1, 2048, %s27_s15, [#allocation6], %s280_s20, %s280_s20, %s281_s21  }
  0x17   :  { %272 = dma.done.wait [#allocation3], 128  }
  0x18   :  { %273 = vsyncadd [#allocation3], 4294967168 }
  0x19   :  { %274 = dma.done.wait [#allocation6], 2048  }
  0x1a   :  { %275 = vsyncadd [#allocation6], 4294965248  ;;  %v282_v0 = vmov 0.0   ;;  %vm283_vm0 = vmmov 0   ;;  %v57_v1 = vld [vmem:[#allocation5 + $0x78] sm:$0xff]  ;;  %v56_v2 = vld [vmem:[#allocation5 + $0x70] sm:$0xff] }
  0x1b   :  { %170 = vmatprep.subr.mxu0 %v282_v0  ;;  %202 = vmatprep.mubr.msk.f32.mxu0 %vm283_vm0, %v282_v0  ;;  %v55_v3 = vld [vmem:[#allocation5 + $0x68] sm:$0xff]  ;;  %v54_v4 = vld [vmem:[#allocation5 + $0x60] sm:$0xff]  ;;  %v53_v5 = vld [vmem:[#allocation5 + $0x58] sm:$0xff]  ;;  %s284_s24 = smov [#allocation7]  }
  0x1c   :  { %171 = vmatpush3.msra.mxu0 %v57_v1  ;;  %v52_v6 = vld [vmem:[#allocation5 + $0x50] sm:$0xff]  ;;  %v51_v7 = vld [vmem:[#allocation5 + $0x48] sm:$0xff]  ;;  %v50_v8 = vld [vmem:[#allocation5 + $0x40] sm:$0xff]  ;;  %s142_s25 = sshll.u32 %s284_s24, 4  ;;  %s143_s25 = int_to_ptr.vmem [resolvable:$true] %s142_s25 }
  0x1d   :  { %172 = vmatprep.subr.mxu0 %v282_v0  ;;  %v49_v9 = vld [vmem:[#allocation5 + $0x38] sm:$0xff]  ;;  %v48_v10 = vld [vmem:[#allocation5 + $0x30] sm:$0xff]  ;;  %v47_v11 = vld [vmem:[#allocation5 + $0x28] sm:$0xff]  ;;  %s252_s26 = scalar_lea.vmem %s143_s25, 128  ;;  %p257_p11 = scmp.lt.s32.totalorder %s143_s25, %s143_s25 }
  0x1e   :  { %173 = vmatpush3.msra.mxu0 %v56_v2  ;;  %v46_v12 = vld [vmem:[#allocation5 + $0x20] sm:$0xff]  ;;  %v45_v13 = vld [vmem:[#allocation5 + $0x18] sm:$0xff]  ;;  %v44_v14 = vld [vmem:[#allocation5 + $0x10] sm:$0xff]  ;;  %p253_p10 = scmp.ne.s32.totalorder %s143_s25, %s252_s26  ;;  %p258_p12 = scmp.lt.s32.totalorder %s252_s26, %s252_s26 }
  0x1f   :  { %174 = vmatprep.subr.mxu0 %v282_v0  ;;  %v43_v15 = vld [vmem:[#allocation5 + $0x8] sm:$0xff]  ;;  %v42_v16 = vld [vmem:[#allocation5] sm:$0xff]  ;;  %v41_v17 = vld [vmem:[#allocation2] sm:$0xff] }
  0x20   :  { %175 = vmatpush3.msra.mxu0 %v55_v3  ;;  %v152_v18 = vld [vmem:[%s319_s2] ss:$0 sm:$0xff]  ;;  %p259_p13 = por %p258_p12, %p257_p11 }
  0x21   :  { %176 = vmatprep.subr.mxu0 %v282_v0 }
  0x22   :  { %177 = vmatpush3.msra.mxu0 %v54_v4  ;;  %p260_p0 = pnand %p259_p13, %p253_p10 }
  0x23   :  { %178 = vmatprep.subr.mxu0 %v282_v0 }
  0x24   :  { %179 = vmatpush3.msra.mxu0 %v53_v5 }
  0x25   :  { %180 = vmatprep.subr.mxu0 %v282_v0 }
  0x26   :  { %181 = vmatpush3.msra.mxu0 %v52_v6 }
  0x27   :  { %182 = vmatprep.subr.mxu0 %v282_v0 }
  0x28   :  { %183 = vmatpush3.msra.mxu0 %v51_v7 }
  0x29   :  { %184 = vmatprep.subr.mxu0 %v282_v0 }
  0x2a   :  { %185 = vmatpush3.msra.mxu0 %v50_v8 }
  0x2b   :  { %186 = vmatprep.subr.mxu0 %v282_v0 }
  0x2c   :  { %187 = vmatpush3.msra.mxu0 %v49_v9 }
  0x2d   :  { %188 = vmatprep.subr.mxu0 %v282_v0 }
  0x2e   :  { %189 = vmatpush3.msra.mxu0 %v48_v10 }
  0x2f   :  { %190 = vmatprep.subr.mxu0 %v282_v0 }
  0x30   :  { %191 = vmatpush3.msra.mxu0 %v47_v11 }
  0x31   :  { %192 = vmatprep.subr.mxu0 %v282_v0 }
  0x32   :  { %193 = vmatpush3.msra.mxu0 %v46_v12 }
  0x33   :  { %194 = vmatprep.subr.mxu0 %v282_v0 }
  0x34   :  { %195 = vmatpush3.msra.mxu0 %v45_v13 }
  0x35   :  { %196 = vmatprep.subr.mxu0 %v282_v0 }
  0x36   :  { %197 = vmatpush3.msra.mxu0 %v44_v14 }
  0x37   :  { %198 = vmatprep.subr.mxu0 %v282_v0 }
  0x38   :  { %199 = vmatpush3.msra.mxu0 %v43_v15 }
  0x39   :  { %200 = vmatprep.subr.mxu0 %v282_v0 }
  0x3a   :  { %201 = vmatpush3.msra.mxu0 %v42_v16 }
  0x3b   :  { %203 = vmatmul.mubr.f32.vlgmr.msra.gmra.mxu0 %v41_v17 }
  0xfb   :  { %v131_v19 = vpop.f32.mrf.mxu0 }
  0xfc   :  { %v132_v20 = vadd.f32 %v152_v18, %v131_v19 }
  0xfd   :  { %v204_v21 = vpop.f32.mrf.mxu0 }
  0xfe   :  { %135 = vst [vmem:[#allocation7] sm:$0xff] %v132_v20 }
  0xff   :  { %263 = shalt.err (!%p260_p0)
}
 0x100   :  { %145 = dma.vmem_to_hbm [thread:$0]  %s143_s25, 128, %s320_s3, [#allocation4]  }
 0x101   :  { %276 = dma.done.wait [#allocation4], 128  }
 0x102   :  { %277 = vsyncadd [#allocation4], 4294967168 }
 0x103   :  { %149 = vsyncpa [#allocation3], 1 }
 0x104   :  { %150 = vsyncpa [#allocation6], 1 }
 0x105   :  { %151 = vsyncpa [#allocation4], 1 }

</bundles_post_ra>
